<compile_context>
chip_gen: v7x
topology: tpu7x:2x2x1
jax: 0.10.0
libtpu: 0.0.40
codegen_flags: <defaults>
</compile_context>

<pallas_src>
import jax
import jax.numpy as jnp
from jax.experimental import pallas as pl
from jax.experimental.pallas import tpu as pltpu

_SQRT_HALF = 0.7071067811865476


def _erf(x):
    # Abramowitz & Stegun 7.1.26 polynomial erf, max abs err ~1.5e-7.
    a1, a2, a3, a4, a5 = (0.254829592, -0.284496736, 1.421413741,
                          -1.453152027, 1.061405429)
    p = 0.3275911
    sgn = jnp.where(x < 0.0, -1.0, 1.0)
    ax = jnp.abs(x)
    d = 1.0 + p * ax
    t = pl.reciprocal(d, approx=True)       # EUP slot
    t = t * (2.0 - d * t)                   # one Newton step -> ~f32-accurate 1/d
    poly = ((((a5 * t + a4) * t + a3) * t + a2) * t + a1) * t
    return sgn * (1.0 - poly * jnp.exp(-ax * ax))


def _gelu(x):
    # matches torch.nn.GELU() default (erf-based) up to the erf approximation above
    return 0.5 * x * (1.0 + _erf(x * _SQRT_HALF))


def _critic_kernel(inp_ref, wg_ref, embm_ref, blat_ref, wf_ref, bf_ref,
                   out_ref, lat_ref):
    # Batch-in-lanes layout: feature axis on sublanes, batch on the 128-wide lane axis.
    rho = inp_ref[0:1, :]                              # [1, TB]
    neg_phi = -inp_ref[1:2, :]                         # [1, TB]
    idx = inp_ref[2:3, :]                              # [1, TB] float-encoded small int
    c = jnp.cos(neg_phi)                               # EUP
    s = jnp.sin(neg_phi)                               # EUP

    # Folded goal path: latent = wg[:,0]*rho + wg[:,1]*c + wg[:,2]*s + blat
    wg = wg_ref[...]                                   # [H, 3]
    latent = (wg[:, 0:1] * rho + wg[:, 1:2] * c + wg[:, 2:3] * s
              + blat_ref[...])                         # [H, TB]

    # Folded prev-action embedding: select-sum over the tiny (H x n_emb) table.
    embm = embm_ref[...]                               # [H, n_emb]
    n_emb = embm_ref.shape[1]
    for e in range(n_emb):                             # static unroll (n_emb small)
        sel = (idx == jnp.float32(e)).astype(jnp.float32)     # [1, TB]
        latent = latent + sel * embm[:, e:e + 1]

    lat_ref[...] = latent                              # lane-dense [H, TB] store

    # fc(gelu(latent)): H -> 1 as VPU multiply + cross-sublane reduce.
    g = _gelu(latent)                                  # [H, TB], lane-dense VPU work
    out_ref[...] = (jnp.sum(g * wf_ref[...], axis=0, keepdims=True)
                    + bf_ref[...])                     # [1, TB]


def _round_up(x, m):
    return ((x + m - 1) // m) * m


def pointnav_goal_distance_critic(params, observations, prev_actions, masks,
                                  *, tile_b=8192):
    """Returns (out [B, 1], latent [B, H]) matching the PyTorch forward."""
    goal = observations["pointgoal_with_gps_compass"]
    assert goal.shape[1] == 2, "Only support 2D goal encoding"
    goal = goal.astype(jnp.float32)
    B = goal.shape[0]
    H = params["w_mix"].shape[1]
    n_emb = params["emb"].shape[0]

    # ---- fold the linear layers / embedding through w_mix (no nonlinearity between) ----
    w_mix = params["w_mix"].astype(jnp.float32)                         # [64, H]
    wg = (params["w_tgt"].astype(jnp.float32) @ w_mix[:32]).T           # [H, 3]
    embm = (params["emb"].astype(jnp.float32) @ w_mix[32:]).T           # [H, n_emb]
    blat = (params["b_tgt"].astype(jnp.float32) @ w_mix[:32]
            + params["b_mix"].astype(jnp.float32)).T                    # [H, 1]
    wf = params["w_fc"].astype(jnp.float32).reshape(H, 1)               # [H, 1]
    bf = params["b_fc"].astype(jnp.float32).reshape(1, 1)               # [1, 1]

    # ---- pack inputs into one lane-dense slab: [3, B] = (rho, phi, idx-as-float) ----
    pa = prev_actions.reshape(-1).astype(jnp.int32)
    mk = masks.reshape(-1)
    idx_f = jnp.where(mk != 0, pa + 1, jnp.zeros_like(pa)).astype(jnp.float32)
    inp = jnp.stack([goal[:, 0], goal[:, 1], idx_f], axis=0)            # [3, B]

    # ---- batch tiling: batch lives on the lane axis, TB is a multiple of 128 ----
    B_lane = _round_up(B, 128)
    TB = min(_round_up(int(tile_b), 128), B_lane)
    if TB >= B_lane and B_lane % 256 == 0:
        TB = B_lane // 2        # keep >=2 grid steps so v7x can shard across both TCs
    B_pad = _round_up(B_lane, TB)
    if B_pad != B:
        inp = jnp.pad(inp, ((0, 0), (0, B_pad - B)))
    grid = (B_pad // TB,)

    batch_idx = lambda i: (0, i)     # noqa: E731
    const_idx = lambda i: (0, 0)     # noqa: E731  (weights stay VMEM-resident)

    out_t, lat_t = pl.pallas_call(
        _critic_kernel,
        out_shape=(
            jax.ShapeDtypeStruct((1, B_pad), jnp.float32),   # out  (batch in lanes)
            jax.ShapeDtypeStruct((H, B_pad), jnp.float32),   # latent (batch in lanes)
        ),
        grid=grid,
        in_specs=[
            pl.BlockSpec((3, TB), batch_idx),       # packed (rho, phi, idx) slab
            pl.BlockSpec((H, 3), const_idx),        # folded goal weights
            pl.BlockSpec((H, n_emb), const_idx),    # folded embedding table
            pl.BlockSpec((H, 1), const_idx),        # folded latent bias
            pl.BlockSpec((H, 1), const_idx),        # fc weight (as a column)
            pl.BlockSpec((1, 1), const_idx),        # fc bias
        ],
        out_specs=(
            pl.BlockSpec((1, TB), batch_idx),
            pl.BlockSpec((H, TB), batch_idx),
        ),
        compiler_params=pltpu.CompilerParams(
            dimension_semantics=("parallel",)),     # v7x: shard batch tiles across TCs
    )(inp, wg, embm, blat, wf, bf)

    # Transpose back to the PyTorch [batch, feature] convention and drop padding.
    out = out_t.T[:B]        # [B, 1]
    latent = lat_t.T[:B]     # [B, H]
    return out, latent


def init_params(key, hidden_size=32, num_actions=4):
    ks = jax.random.split(key, 7)

    def u(k, shape, bound):
        return jax.random.uniform(k, shape, jnp.float32, -bound, bound)

    # nn.Embedding(num_actions + 1, 32), weight.uniform_(-0.003, 0.003)
    emb = u(ks[0], (num_actions + 1, 32), 0.003)
    # nn.Linear-style uniform init, weights stored [in, out]
    w_tgt = u(ks[1], (3, 32), 1.0 / 3 ** 0.5)
    b_tgt = u(ks[2], (1, 32), 1.0 / 3 ** 0.5)
    w_mix = u(ks[3], (64, hidden_size), 1.0 / 64 ** 0.5)
    b_mix = u(ks[4], (1, hidden_size), 1.0 / 64 ** 0.5)
    w_fc = u(ks[5], (hidden_size, 1), 1.0 / hidden_size ** 0.5)
    b_fc = u(ks[6], (1, 1), 1.0 / hidden_size ** 0.5)
    return dict(emb=emb, w_tgt=w_tgt, b_tgt=b_tgt, w_mix=w_mix, b_mix=b_mix,
                w_fc=w_fc, b_fc=b_fc)


if __name__ == "__main__":
    key = jax.random.PRNGKey(0)
    kp, kg, ka, km = jax.random.split(key, 4)
    # B not a multiple of 128 -> exercises lane padding; tile_b=128 -> 3-step grid.
    B, H, NUM_ACTIONS = 300, 32, 4

    params = init_params(kp, hidden_size=H, num_actions=NUM_ACTIONS)
    goal = jax.random.normal(kg, (B, 2), jnp.float32)                  # (rho, phi)
    prev_actions = jax.random.randint(ka, (B, 1), 0, NUM_ACTIONS, jnp.int32)
    masks = (jax.random.uniform(km, (B, 1)) > 0.5).astype(jnp.float32)
    observations = {"pointgoal_with_gps_compass": goal}

    out, latent = pointnav_goal_distance_critic(
        params, observations, prev_actions, masks, tile_b=128)
    jax.block_until_ready((out, latent))

    # pure-JAX reference (unfolded, matches the PyTorch forward literally)
    goal3 = jnp.stack([goal[:, 0], jnp.cos(-goal[:, 1]), jnp.sin(-goal[:, 1])], -1)
    tgt_r = goal3 @ params["w_tgt"] + params["b_tgt"]
    idx_r = jnp.where(masks.reshape(-1) != 0, prev_actions.reshape(-1) + 1, 0)
    act_r = params["emb"][idx_r]
    lat_r = jnp.concatenate([tgt_r, act_r], axis=1) @ params["w_mix"] + params["b_mix"]
    out_r = jax.nn.gelu(lat_r, approximate=False) @ params["w_fc"] + params["b_fc"]

    assert out.shape == (B, 1) and latent.shape == (B, H)
    assert jnp.allclose(latent, lat_r, atol=2e-5), "latent mismatch"
    assert jnp.allclose(out, out_r, atol=1e-4), "out mismatch"
    print("KERNEL_OK")
</pallas_src>

<mosaic_0001>
module attributes {stable_mosaic.version = 11 : i64} {
  func.func @_critic_kernel(%arg0: i32, %arg1: memref<3x128xf32, #tpu.memory_space<vmem>>, %arg2: memref<32x3xf32, #tpu.memory_space<vmem>>, %arg3: memref<32x5xf32, #tpu.memory_space<vmem>>, %arg4: memref<32x1xf32, #tpu.memory_space<vmem>>, %arg5: memref<32x1xf32, #tpu.memory_space<vmem>>, %arg6: memref<1x1xf32, #tpu.memory_space<vmem>>, %arg7: memref<1x128xf32, #tpu.memory_space<vmem>>, %arg8: memref<32x128xf32, #tpu.memory_space<vmem>>) attributes {dimension_semantics = [#tpu.dimension_semantics<parallel>], iteration_bounds = array<i64: 3>, scalar_prefetch = 0 : i64, scratch_operands = 0 : i64, tpu.core_type = #tpu.core_type<tc>, window_params = [{transform_indices = @transform_0, window_bounds = array<i64: 3, 128>}, {pipeline_mode = #tpu.pipeline_mode<synchronous>, transform_indices = @transform_1, window_bounds = array<i64: 32, 3>}, {pipeline_mode = #tpu.pipeline_mode<synchronous>, transform_indices = @transform_2, window_bounds = array<i64: 32, 5>}, {pipeline_mode = #tpu.pipeline_mode<synchronous>, transform_indices = @transform_3, window_bounds = array<i64: 32, 1>}, {pipeline_mode = #tpu.pipeline_mode<synchronous>, transform_indices = @transform_4, window_bounds = array<i64: 32, 1>}, {pipeline_mode = #tpu.pipeline_mode<synchronous>, transform_indices = @transform_5, window_bounds = array<i64: 1, 1>}, {transform_indices = @transform_6, window_bounds = array<i64: 1, 128>}, {transform_indices = @transform_7, window_bounds = array<i64: 32, 128>}]} {
    %c0 = arith.constant 0 : index
    %c0_0 = arith.constant 0 : index
    %0 = vector.load %arg1[%c0, %c0_0] : memref<3x128xf32, #tpu.memory_space<vmem>>, vector<1x128xf32>
    %c1 = arith.constant 1 : index
    %c0_1 = arith.constant 0 : index
    %1 = vector.load %arg1[%c1, %c0_1] : memref<3x128xf32, #tpu.memory_space<vmem>>, vector<1x128xf32>
    %cst = arith.constant 0.000000e+00 : f32
    %2 = vector.broadcast %cst : f32 to vector<1x128xf32>
    %3 = arith.subf %2, %1 : vector<1x128xf32>
    %c2 = arith.constant 2 : index
    %c0_2 = arith.constant 0 : index
    %4 = vector.load %arg1[%c2, %c0_2] : memref<3x128xf32, #tpu.memory_space<vmem>>, vector<1x128xf32>
    %5 = math.cos %3 : vector<1x128xf32>
    %6 = math.sin %3 : vector<1x128xf32>
    %c0_3 = arith.constant 0 : index
    %c0_4 = arith.constant 0 : index
    %7 = vector.load %arg2[%c0_3, %c0_4] : memref<32x3xf32, #tpu.memory_space<vmem>>, vector<32x3xf32>
    %8 = vector.extract_strided_slice %7 {offsets = [0, 0], sizes = [32, 1], strides = [1, 1]} : vector<32x3xf32> to vector<32x1xf32>
    %9 = vector.broadcast %8 : vector<32x1xf32> to vector<32x128xf32>
    %10 = vector.broadcast %0 : vector<1x128xf32> to vector<32x128xf32>
    %11 = arith.mulf %9, %10 : vector<32x128xf32>
    %12 = vector.extract_strided_slice %7 {offsets = [0, 1], sizes = [32, 1], strides = [1, 1]} : vector<32x3xf32> to vector<32x1xf32>
    %13 = vector.broadcast %12 : vector<32x1xf32> to vector<32x128xf32>
    %14 = vector.broadcast %5 : vector<1x128xf32> to vector<32x128xf32>
    %15 = arith.mulf %13, %14 : vector<32x128xf32>
    %16 = arith.addf %11, %15 : vector<32x128xf32>
    %17 = vector.extract_strided_slice %7 {offsets = [0, 2], sizes = [32, 1], strides = [1, 1]} : vector<32x3xf32> to vector<32x1xf32>
    %18 = vector.broadcast %17 : vector<32x1xf32> to vector<32x128xf32>
    %19 = vector.broadcast %6 : vector<1x128xf32> to vector<32x128xf32>
    %20 = arith.mulf %18, %19 : vector<32x128xf32>
    %21 = arith.addf %16, %20 : vector<32x128xf32>
    %c0_5 = arith.constant 0 : index
    %c0_6 = arith.constant 0 : index
    %22 = vector.load %arg4[%c0_5, %c0_6] : memref<32x1xf32, #tpu.memory_space<vmem>>, vector<32x1xf32>
    %23 = vector.broadcast %22 : vector<32x1xf32> to vector<32x128xf32>
    %24 = arith.addf %21, %23 : vector<32x128xf32>
    %c0_7 = arith.constant 0 : index
    %c0_8 = arith.constant 0 : index
    %25 = vector.load %arg3[%c0_7, %c0_8] : memref<32x5xf32, #tpu.memory_space<vmem>>, vector<32x5xf32>
    %cst_9 = arith.constant 0.000000e+00 : f32
    %26 = vector.broadcast %cst_9 : f32 to vector<1x128xf32>
    %27 = arith.cmpf oeq, %4, %26 : vector<1x128xf32>
    %28 = arith.extui %27 : vector<1x128xi1> to vector<1x128xi32>
    %29 = arith.sitofp %28 : vector<1x128xi32> to vector<1x128xf32>
    %30 = vector.extract_strided_slice %25 {offsets = [0, 0], sizes = [32, 1], strides = [1, 1]} : vector<32x5xf32> to vector<32x1xf32>
    %31 = vector.broadcast %29 : vector<1x128xf32> to vector<32x128xf32>
    %32 = vector.broadcast %30 : vector<32x1xf32> to vector<32x128xf32>
    %33 = arith.mulf %31, %32 : vector<32x128xf32>
    %34 = arith.addf %24, %33 : vector<32x128xf32>
    %cst_10 = arith.constant 1.000000e+00 : f32
    %35 = vector.broadcast %cst_10 : f32 to vector<1x128xf32>
    %36 = arith.cmpf oeq, %4, %35 : vector<1x128xf32>
    %37 = arith.extui %36 : vector<1x128xi1> to vector<1x128xi32>
    %38 = arith.sitofp %37 : vector<1x128xi32> to vector<1x128xf32>
    %39 = vector.extract_strided_slice %25 {offsets = [0, 1], sizes = [32, 1], strides = [1, 1]} : vector<32x5xf32> to vector<32x1xf32>
    %40 = vector.broadcast %38 : vector<1x128xf32> to vector<32x128xf32>
    %41 = vector.broadcast %39 : vector<32x1xf32> to vector<32x128xf32>
    %42 = arith.mulf %40, %41 : vector<32x128xf32>
    %43 = arith.addf %34, %42 : vector<32x128xf32>
    %cst_11 = arith.constant 2.000000e+00 : f32
    %44 = vector.broadcast %cst_11 : f32 to vector<1x128xf32>
    %45 = arith.cmpf oeq, %4, %44 : vector<1x128xf32>
    %46 = arith.extui %45 : vector<1x128xi1> to vector<1x128xi32>
    %47 = arith.sitofp %46 : vector<1x128xi32> to vector<1x128xf32>
    %48 = vector.extract_strided_slice %25 {offsets = [0, 2], sizes = [32, 1], strides = [1, 1]} : vector<32x5xf32> to vector<32x1xf32>
    %49 = vector.broadcast %47 : vector<1x128xf32> to vector<32x128xf32>
    %50 = vector.broadcast %48 : vector<32x1xf32> to vector<32x128xf32>
    %51 = arith.mulf %49, %50 : vector<32x128xf32>
    %52 = arith.addf %43, %51 : vector<32x128xf32>
    %cst_12 = arith.constant 3.000000e+00 : f32
    %53 = vector.broadcast %cst_12 : f32 to vector<1x128xf32>
    %54 = arith.cmpf oeq, %4, %53 : vector<1x128xf32>
    %55 = arith.extui %54 : vector<1x128xi1> to vector<1x128xi32>
    %56 = arith.sitofp %55 : vector<1x128xi32> to vector<1x128xf32>
    %57 = vector.extract_strided_slice %25 {offsets = [0, 3], sizes = [32, 1], strides = [1, 1]} : vector<32x5xf32> to vector<32x1xf32>
    %58 = vector.broadcast %56 : vector<1x128xf32> to vector<32x128xf32>
    %59 = vector.broadcast %57 : vector<32x1xf32> to vector<32x128xf32>
    %60 = arith.mulf %58, %59 : vector<32x128xf32>
    %61 = arith.addf %52, %60 : vector<32x128xf32>
    %cst_13 = arith.constant 4.000000e+00 : f32
    %62 = vector.broadcast %cst_13 : f32 to vector<1x128xf32>
    %63 = arith.cmpf oeq, %4, %62 : vector<1x128xf32>
    %64 = arith.extui %63 : vector<1x128xi1> to vector<1x128xi32>
    %65 = arith.sitofp %64 : vector<1x128xi32> to vector<1x128xf32>
    %66 = vector.extract_strided_slice %25 {offsets = [0, 4], sizes = [32, 1], strides = [1, 1]} : vector<32x5xf32> to vector<32x1xf32>
    %67 = vector.broadcast %65 : vector<1x128xf32> to vector<32x128xf32>
    %68 = vector.broadcast %66 : vector<32x1xf32> to vector<32x128xf32>
    %69 = arith.mulf %67, %68 : vector<32x128xf32>
    %70 = arith.addf %61, %69 : vector<32x128xf32>
    %c0_14 = arith.constant 0 : index
    %c0_15 = arith.constant 0 : index
    %71 = vector.load %arg8[%c0_14, %c0_15] : memref<32x128xf32, #tpu.memory_space<vmem>>, vector<32x128xf32>
    tpu.vector_store %arg8[%c0_14, %c0_15], %70 {strides = array<i32>} : memref<32x128xf32, #tpu.memory_space<vmem>>, vector<32x128xf32>,
    %cst_16 = arith.constant 5.000000e-01 : f32
    %72 = vector.broadcast %cst_16 : f32 to vector<32x128xf32>
    %73 = arith.mulf %72, %70 : vector<32x128xf32>
    %cst_17 = arith.constant 0.707106769 : f32
    %74 = vector.broadcast %cst_17 : f32 to vector<32x128xf32>
    %75 = arith.mulf %70, %74 : vector<32x128xf32>
    %cst_18 = arith.constant 0.000000e+00 : f32
    %76 = vector.broadcast %cst_18 : f32 to vector<32x128xf32>
    %77 = arith.cmpf olt, %75, %76 : vector<32x128xf32>
    %cst_19 = arith.constant -1.000000e+00 : f32
    %cst_20 = arith.constant 1.000000e+00 : f32
    %78 = vector.broadcast %cst_19 : f32 to vector<32x128xf32>
    %79 = vector.broadcast %cst_20 : f32 to vector<32x128xf32>
    %80 = arith.select %77, %78, %79 : vector<32x128xi1>, vector<32x128xf32>
    %81 = math.absf %75 : vector<32x128xf32>
    %cst_21 = arith.constant 0.327591091 : f32
    %82 = vector.broadcast %cst_21 : f32 to vector<32x128xf32>
    %83 = arith.mulf %82, %81 : vector<32x128xf32>
    %cst_22 = arith.constant 1.000000e+00 : f32
    %84 = vector.broadcast %cst_22 : f32 to vector<32x128xf32>
    %85 = arith.addf %84, %83 : vector<32x128xf32>
    %86 = tpu.reciprocal %85 {approx = true} : vector<32x128xf32> -> vector<32x128xf32>
    %87 = arith.mulf %85, %86 : vector<32x128xf32>
    %cst_23 = arith.constant 2.000000e+00 : f32
    %88 = vector.broadcast %cst_23 : f32 to vector<32x128xf32>
    %89 = arith.subf %88, %87 : vector<32x128xf32>
    %90 = arith.mulf %86, %89 : vector<32x128xf32>
    %cst_24 = arith.constant 1.06140542 : f32
    %91 = vector.broadcast %cst_24 : f32 to vector<32x128xf32>
    %92 = arith.mulf %91, %90 : vector<32x128xf32>
    %cst_25 = arith.constant -1.45315206 : f32
    %93 = vector.broadcast %cst_25 : f32 to vector<32x128xf32>
    %94 = arith.addf %92, %93 : vector<32x128xf32>
    %95 = arith.mulf %94, %90 : vector<32x128xf32>
    %cst_26 = arith.constant 1.42141378 : f32
    %96 = vector.broadcast %cst_26 : f32 to vector<32x128xf32>
    %97 = arith.addf %95, %96 : vector<32x128xf32>
    %98 = arith.mulf %97, %90 : vector<32x128xf32>
    %cst_27 = arith.constant -0.284496725 : f32
    %99 = vector.broadcast %cst_27 : f32 to vector<32x128xf32>
    %100 = arith.addf %98, %99 : vector<32x128xf32>
    %101 = arith.mulf %100, %90 : vector<32x128xf32>
    %cst_28 = arith.constant 0.254829586 : f32
    %102 = vector.broadcast %cst_28 : f32 to vector<32x128xf32>
    %103 = arith.addf %101, %102 : vector<32x128xf32>
    %104 = arith.mulf %103, %90 : vector<32x128xf32>
    %cst_29 = arith.constant 0.000000e+00 : f32
    %105 = vector.broadcast %cst_29 : f32 to vector<32x128xf32>
    %106 = arith.subf %105, %81 : vector<32x128xf32>
    %107 = arith.mulf %106, %81 : vector<32x128xf32>
    %108 = math.exp %107 : vector<32x128xf32>
    %109 = arith.mulf %104, %108 : vector<32x128xf32>
    %cst_30 = arith.constant 1.000000e+00 : f32
    %110 = vector.broadcast %cst_30 : f32 to vector<32x128xf32>
    %111 = arith.subf %110, %109 : vector<32x128xf32>
    %112 = arith.mulf %80, %111 : vector<32x128xf32>
    %cst_31 = arith.constant 1.000000e+00 : f32
    %113 = vector.broadcast %cst_31 : f32 to vector<32x128xf32>
    %114 = arith.addf %113, %112 : vector<32x128xf32>
    %115 = arith.mulf %73, %114 : vector<32x128xf32>
    %c0_32 = arith.constant 0 : index
    %c0_33 = arith.constant 0 : index
    %116 = vector.load %arg5[%c0_32, %c0_33] : memref<32x1xf32, #tpu.memory_space<vmem>>, vector<32x1xf32>
    %117 = vector.broadcast %116 : vector<32x1xf32> to vector<32x128xf32>
    %118 = arith.mulf %115, %117 : vector<32x128xf32>
    %cst_34 = arith.constant dense<0.000000e+00> : vector<128xf32>
    %119 = vector.multi_reduction <add>, %118, %cst_34 [0] : vector<32x128xf32> to vector<128xf32>
    %120 = vector.shape_cast %119 : vector<128xf32> to vector<1x128xf32>
    %c0_35 = arith.constant 0 : index
    %c0_36 = arith.constant 0 : index
    %121 = vector.load %arg6[%c0_35, %c0_36] : memref<1x1xf32, #tpu.memory_space<vmem>>, vector<1x1xf32>
    %122 = vector.broadcast %121 : vector<1x1xf32> to vector<1x128xf32>
    %123 = arith.addf %120, %122 : vector<1x128xf32>
    %c0_37 = arith.constant 0 : index
    %c0_38 = arith.constant 0 : index
    %124 = vector.load %arg7[%c0_37, %c0_38] : memref<1x128xf32, #tpu.memory_space<vmem>>, vector<1x128xf32>
    tpu.vector_store %arg7[%c0_37, %c0_38], %123 {strides = array<i32>} : memref<1x128xf32, #tpu.memory_space<vmem>>, vector<1x128xf32>,
    return
  }
  func.func @transform_0(%arg0: i32) -> (i32, i32) {
    %c0_i32 = arith.constant 0 : i32
    %c0_i32_0 = arith.constant 0 : i32
    return %c0_i32, %arg0 : i32, i32
  }
  func.func @transform_1(%arg0: i32) -> (i32, i32) {
    %c0_i32 = arith.constant 0 : i32
    %c0_i32_0 = arith.constant 0 : i32
    %c0_i32_1 = arith.constant 0 : i32
    return %c0_i32, %c0_i32_0 : i32, i32
  }
  func.func @transform_2(%arg0: i32) -> (i32, i32) {
    %c0_i32 = arith.constant 0 : i32
    %c0_i32_0 = arith.constant 0 : i32
    %c0_i32_1 = arith.constant 0 : i32
    return %c0_i32, %c0_i32_0 : i32, i32
  }
  func.func @transform_3(%arg0: i32) -> (i32, i32) {
    %c0_i32 = arith.constant 0 : i32
    %c0_i32_0 = arith.constant 0 : i32
    %c0_i32_1 = arith.constant 0 : i32
    return %c0_i32, %c0_i32_0 : i32, i32
  }
  func.func @transform_4(%arg0: i32) -> (i32, i32) {
    %c0_i32 = arith.constant 0 : i32
    %c0_i32_0 = arith.constant 0 : i32
    %c0_i32_1 = arith.constant 0 : i32
    return %c0_i32, %c0_i32_0 : i32, i32
  }
  func.func @transform_5(%arg0: i32) -> (i32, i32) {
    %c0_i32 = arith.constant 0 : i32
    %c0_i32_0 = arith.constant 0 : i32
    %c0_i32_1 = arith.constant 0 : i32
    return %c0_i32, %c0_i32_0 : i32, i32
  }
  func.func @transform_6(%arg0: i32) -> (i32, i32) {
    %c0_i32 = arith.constant 0 : i32
    %c0_i32_0 = arith.constant 0 : i32
    return %c0_i32, %arg0 : i32, i32
  }
  func.func @transform_7(%arg0: i32) -> (i32, i32) {
    %c0_i32 = arith.constant 0 : i32
    %c0_i32_0 = arith.constant 0 : i32
    return %c0_i32, %arg0 : i32, i32
  }
}

</mosaic_0001>

<bundles_post_ra>
// kernel: tpu_custom_call.1
= control target key start
LH: loop header
LB: loop body
LE: loop exit
PB: predicated region body
PF: predicated region fallthrough
CT: control target
= control target key end

     0   :  { %s1698_s0 = inlined_call_operand.vmem [shape: f32[3,384], index: 0, kind: input, shape index: {}]   ;;  %s1699_s1 = inlined_call_operand.vmem [shape: f32[32,3], index: 1, kind: input, shape index: {}]   ;;  %s1700_s2 = inlined_call_operand.vmem [shape: f32[32,5], index: 2, kind: input, shape index: {}]   ;;  %s1701_s3 = inlined_call_operand.vmem [shape: f32[32,1], index: 3, kind: input, shape index: {}]   ;;  %s1702_s4 = inlined_call_operand.vmem [shape: f32[32,1], index: 4, kind: input, shape index: {}]   ;;  %s1703_s5 = inlined_call_operand.<no memory space> [shape: f32[1,1], index: 5, kind: input, shape index: {}]   ;;  %s1704_s6 = inlined_call_operand.hbm [shape: f32[1,384], index: 6, kind: output, shape index: {0}]   ;;  %s1705_s7 = inlined_call_operand.hbm [shape: f32[32,384], index: 7, kind: output, shape index: {1}]  }
   0x1   :  { %v13_v0 = vstv %s1703_s5 }
   0x2   :  { %14 = vst [vmem:[#allocation2] sm:$0x1] %v13_v0 }
   0x3   :  { %15 = vsyncpa [#allocation4], 0 }
   0x4   :  { %17 = vsyncpa [#allocation4 + $0x1], 0 }
   0x5   :  { %18 = vsyncpa [#allocation6], 0 }
   0x6   :  { %20 = vsyncpa [#allocation6 + $0x1], 0  ;;  %s1353_s26 = smov 0   ;;  %s1355_s27 = smov 0  }
   0x7   :  { %s1357_s28 = smov 0   ;;  %s1359_s29 = smov 0  }
   0x8 LB: > { %s1374_s5 = sadd.s32 4294967295, %s1290_s29   ;;  %s1065_s30 = sadd.s32 4294967294, %s1290_s29   ;;  %s1290_s29 = sphi %s1359_s29, %s1711_s29   ;;  %s1286_s28 = sphi %s1357_s28, %s1710_s28   ;;  %s1282_s27 = sphi %s1355_s27, %s1709_s27   ;;  %s1278_s26 = sphi %s1353_s26, %s1708_s26  }
   0x9   : > { %s1378_s8 = sadd.s32 1, %s1290_s29   ;;  %s164_s9 = sadd.s32 1, %s1286_s28 }
   0xa   : > { %s161_s10 = ssub.s32 %s1290_s29, %s1378_s8  ;;  %p174_p0 = scmp.ne.s32.totalorder %s1286_s28, %s1282_s27 }
   0xb   : > { %p162_p1 = scmp.eq.s32.totalorder %s161_s10, 0  ;;  %p175_p2 = scmp.eq.s32.totalorder %s1374_s5, 2 }
   0xc   : > { %p180_p3 = scmp.ne.s32.totalorder %s1282_s27, %s1278_s26  ;;  %p181_p4 = scmp.eq.s32.totalorder %s1065_s30, 2 }
   0xd   : > { %s1389_s11 = scalar_select %p162_p1, %s1286_s28, %s164_s9  }
   0xe   : > { %p1391_p5 = por %p175_p2, %p174_p0  ;;  %p1395_p6 = por %p181_p4, %p180_p3 }
   0xf   : > { %p1068_p7 = scmp.ge.s32.totalorder %s1290_s29, 1  ;;  %p247_p8 = scmp.lt.s32.totalorder %s1290_s29, 4 }
  0x11   : > { %p248_p9 = pnand %p1068_p7, %p247_p8 }
  0x12   : > { %v1404_v1 = vld [vmem:[%s1699_s1] sm:$0xff] (!%p248_p9)  ;;  %v1292_v2 = vmov (!%p248_p9), 1   ;;  %v1293_v3 = vmov (!%p248_p9), 0   ;;  %p282_p10 = scmp.lt.s32.totalorder (!%p248_p9), %s1374_s5, 2  ;;  %v498_v4 = vld [vmem:[%s1699_s1 + $0x8] sm:$0xff] (!%p248_p9)  ;;  %v499_v5 = vld [vmem:[%s1699_s1 + $0x10] sm:$0xff] (!%p248_p9) }
  0x13   : > { %251 = sbr.rel (%p248_p9) target bundleno = 345 (0x159), region = 44  ;;  %1155 = vset.pattern.permute.xlu1 (!%p248_p9), %v1292_v2  ;;  %1154 = vset.pattern.permute.xlu0 (!%p248_p9), %v1293_v3  ;;  %v585_v9 = vld [vmem:[%s1701_s3] sm:$0xff] (!%p248_p9)  ;;  %v1294_v12 = vmov (!%p248_p9), 2   ;;  %v1435_v14 = vld [vmem:[%s1700_s2 + $0x8] sm:$0xff] (!%p248_p9)  ;;  %v500_v16 = vld [vmem:[%s1699_s1 + $0x18] sm:$0xff] (!%p248_p9)  ;;  %s1087_s30 = sshll.u32 (!%p248_p9), %s1374_s5, 7 }
  0x14   : > { %530 = vperm.xlu1 (!%p248_p9), %1155, %v1404_v1   ;;  %503 = vperm.xlu0 (!%p248_p9), %1154, %v1404_v1   ;;  %v1447_v18 = vld [vmem:[%s1700_s2 + $0x10] sm:$0xff] (!%p248_p9)  ;;  %v1295_v24 = vmov (!%p248_p9), 683565275   ;;  %v1296_v26 = vmov (!%p248_p9), 2475754826   ;;  %v586_v56 = vld [vmem:[%s1701_s3 + $0x8] sm:$0xff] (!%p248_p9)  ;;  %s1597_s14 = scalar_lea.hbm (!%p248_p9), %s1705_s7, %s1087_s30 }
  0x15   : > { %v1297_v28 = vmov (!%p248_p9), 2131351028   ;;  %v1298_v30 = vmov (!%p248_p9), 2102212464   ;;  %v1299_v32 = vmov (!%p248_p9), 920167782  }
  0x16   : > { %v1300_v39 = vmov (!%p248_p9), 1326507024   ;;  %v1470_v0 = vld [vmem:[%s1700_s2] sm:$0xff] (!%p248_p9)  ;;  %s1304_s17 = smov (!%p248_p9), [#allocation5]  }
  0x18   : > { %534 = vperm.xlu1 (!%p248_p9), %1155, %v498_v4   ;;  %508 = vperm.xlu0 (!%p248_p9), %1154, %v498_v4  }
  0x1a   : > { %s283_s18 = scalar_select %p282_p10, %s1374_s5, 2 }
  0x1c   : > { %s1070_s19 = sshll.u32 %s283_s18, 2  ;;  %538 = vperm.xlu1 %1155, %v499_v5   ;;  %513 = vperm.xlu0 %1154, %v499_v5   ;;  %s1200_s18 = sshll.u32 %s1304_s17, 4  ;;  %s1201_s18 = int_to_ptr.vmem [resolvable:$false] %s1200_s18 }
  0x1d   : > { %s1418_s22 = scalar_lea.vmem %s1698_s0, %s1070_s19  ;;  %s1202_s19 = scalar_lea.vmem %s1201_s18, 1024 }
  0x1e   : > { %v287_v6 = vld [vmem:[%s1418_s22 + $0x1] sm:$0x1] }
  0x1f   : > { %v1424_v7 = vsub.f32 0.0, %v287_v6 }
  0x20   : > { %1156 = vset.pattern.permute.xlu1 %v1294_v12  ;;  %591 = vperm.xlu0 %1154, %v585_v9  }
  0x21   : > { %v293_v8 = vand.u32 2139095040, %v1424_v7  ;;  %v290_v11 = vand.u32 2147483647, %v1424_v7  ;;  %562 = vperm.xlu1 %1156, %v498_v4   ;;  %vm292_vm7 = vcmp.lt.s32.totalorder %v1424_v7, 0  ;;  %vm382_vm12 = vweird.f32 %v1424_v7 }
  0x23   : > { %v294_v10 = vshrl.u32 %v293_v8, 23  ;;  %v297_v17 = vand.u32 8388607, %v290_v11  ;;  %v587_v8 = vld [vmem:[%s1701_s3 + $0x10] sm:$0xff]  ;;  %vm291_vm8 = vcmp.le.f32.partialorder %v290_v11, 0.7853982 }
  0x24   : > { %631 = vperm.xlu0 %1154, %v1435_v14   ;;  %v898_v11 = vld [vmem:[%s1702_s4 + $0x10] sm:$0xff] }
  0x25   : > { %v1071_v13 = vadd.s32 4294967169, %v294_v10  ;;  %1157 = vset.pattern.permute.xlu1 %v1293_v3  ;;  %v298_v21 = vor.u32 8388608, %v297_v17  ;;  %v1301_v17 = vmov 3  }
  0x26   : > { %518 = vperm.xlu1 %1157, %v500_v16  }
  0x27   : > { %v300_v15 = vadd.s32 1, %v1071_v13  ;;  %v338_v41 = vshll.u32 %v298_v21, 8  ;;  %v616_v21 = vld [vmem:[%s1700_s2 + $0x18] sm:$0xff] }
  0x28   : > { %636 = vperm.xlu0 %1154, %v1447_v18  }
  0x29   : > { %vm301_vm0 = vcmp.gt.s32.totalorder %v300_v15, 0 }
  0x2a   : > { %v302_v19 = vsel %vm301_vm0, %v300_v15, 0  ;;  %1158 = vset.pattern.permute.xlu1 %v1294_v12 }
  0x2b   : > { %v304_v20 = vand.u32 31, %v302_v19  ;;  %v303_v22 = vshrl.u32 %v302_v19, 5  ;;  %566 = vperm.xlu1 %1158, %v499_v5   ;;  %v588_v19 = vld [vmem:[%s1701_s3 + $0x18] sm:$0xff] }
  0x2c   : > { %1160 = vset.pattern.permute.xlu0 %v1292_v2 }
  0x2d   : > { %v305_v23 = vsub.s32 32, %v304_v20  ;;  %v307_v25 = vshll.u32 %v1295_v24, %v304_v20  ;;  %v310_v27 = vshll.u32 %v1296_v26, %v304_v20  ;;  %v313_v29 = vshll.u32 %v1297_v28, %v304_v20  ;;  %542 = vperm.xlu0 %1160, %v500_v16  }
  0x2e   : > { %v316_v31 = vshll.u32 %v1298_v30, %v304_v20  ;;  %v319_v33 = vshll.u32 %v1299_v32, %v304_v20  ;;  %vm322_vm1 = vcmp.lt.s32.totalorder %v303_v22, 1  ;;  %vm325_vm2 = vcmp.lt.s32.totalorder %v303_v22, 4 }
  0x2f   : > { %v306_v34 = vshrl.u32 %v1295_v24, %v305_v23  ;;  %v308_v35 = vshrl.u32 %v1296_v26, %v305_v23  ;;  %v311_v36 = vshrl.u32 %v1297_v28, %v305_v23  ;;  %v314_v37 = vshrl.u32 %v1298_v30, %v305_v23  ;;  %570 = vperm.xlu1 %1158, %v500_v16   ;;  %v897_v26 = vld [vmem:[%s1702_s4 + $0x8] sm:$0xff]  ;;  %v933_v28 = vld [vmem:[#allocation2] sm:$0x1] }
  0x30   : > { %v317_v38 = vshrl.u32 %v1299_v32, %v305_v23  ;;  %v320_v40 = vshrl.u32 %v1300_v39, %v305_v23  ;;  %vm323_vm3 = vcmp.lt.s32.totalorder %v303_v22, 2  ;;  %vm324_vm4 = vcmp.lt.s32.totalorder %v303_v22, 3 }
  0x31   : > { %v309_v42 = vor.u32 %v308_v35, %v307_v25  ;;  %v312_v43 = vor.u32 %v311_v36, %v310_v27  ;;  %v315_v44 = vor.u32 %v314_v37, %v313_v29  ;;  %664 = vperm.xlu0 %1160, %v1435_v14   ;;  %v1302_v24 = vmov 4  }
  0x32   : > { %v318_v45 = vor.u32 %v317_v38, %v316_v31  ;;  %v321_v46 = vor.u32 %v320_v40, %v319_v33  ;;  %v896_v40 = vld [vmem:[%s1702_s4] sm:$0xff] }
  0x33   : > { %v326_v47 = vsel %vm322_vm1, %v306_v34, %v309_v42  ;;  %v327_v48 = vsel %vm325_vm2, %v315_v44, 2102212464  ;;  %v330_v49 = vsel %vm322_vm1, %v309_v42, %v312_v43  ;;  %v334_v50 = vsel %vm322_vm1, %v312_v43, %v315_v44  ;;  %1159 = vset.pattern.permute.xlu1 %v1293_v3 }
  0x34   : > { %v328_v51 = vsel %vm324_vm4, %v312_v43, %v327_v48  ;;  %v331_v52 = vsel %vm325_vm2, %v318_v45, 920167782  ;;  %v335_v53 = vsel %vm325_vm2, %v321_v46, 1326507024  ;;  %596 = vperm.xlu1 %1159, %v586_v56   ;;  %v545_v48 = vlaneseq }
  0x35   : > { %v332_v54 = vsel %vm324_vm4, %v315_v44, %v331_v52  ;;  %v336_v55 = vsel %vm324_vm4, %v318_v45, %v335_v53  ;;  %v329_v57 = vsel %vm323_vm3, %v326_v47, %v328_v51  ;;  %668 = vperm.xlu0 %1160, %v1447_v18  }
  0x36   : > { %v333_v58 = vsel %vm323_vm3, %v330_v49, %v332_v54  ;;  %v337_v59 = vsel %vm323_vm3, %v334_v50, %v336_v55  ;;  %v345_v4 = vmul.u32 %v338_v41, %v329_v57  ;;  %v546_v51 = vshrl.u32 %v545_v48, 7 }
  0x37   : > { %v1459_v60 = vmul.u32.u64.low %v338_v41, %v337_v59  ;;  %v1460_v61 = vmul.u32.u64.high %v338_v41, %v337_v59, %v1459_v60  ;;  %v1462_v62 = vmul.u32.u64.low %v338_v41, %v333_v58  ;;  %v1463_v63 = vmul.u32.u64.high %v338_v41, %v333_v58, %v1462_v62  ;;  %v1079_v58 = vld [vmem:[%s1418_s22] ss:$0 sm:$0xff] }
  0x38   : > { %626 = vperm.xlu1 %1159, %v1470_v0   ;;  %v1528_v54 = vsub.s32 0, %v546_v51 }
  0x39   : > { %vm347_vm5 = vc.u32 %v1460_v61, %v1462_v62  ;;  %v348_v5 = vadd.s32 1, %v1463_v63  ;;  %1163 = vset.pattern.permute.xlu0 %v1294_v12  ;;  %v346_v29 = vadd.s32 %v1462_v62, %v1460_v61 }
  0x3a   : > { %558 = vperm.xlu0 %1163, %v1404_v1  }
  0x3b   : > { %v349_v6 = vsel %vm347_vm5, %v348_v5, %v1463_v63 }
  0x3c   : > { %v350_v9 = vadd.s32 %v349_v6, %v345_v4  ;;  %601 = vperm.xlu1 %1159, %v587_v8  }
  0x3e   : > { %v351_v10 = vadd.s32 536870912, %v350_v9  ;;  %695 = vperm.xlu0 %1163, %v1435_v14  }
  0x40   : > { %v1481_v13 = vshrl.u32 %v351_v10, 30  ;;  %1161 = vset.pattern.permute.xlu1 %v1292_v2 }
  0x41   : > { %660 = vperm.xlu1 %1161, %v1470_v0  }
  0x42   : > { %v353_v15 = vshll.u32 %v1481_v13, 30  ;;  %1167 = vset.pattern.permute.xlu0 %v1301_v17  ;;  %v376_v41 = vsub.s32 4, %v1481_v13 }
  0x43   : > { %722 = vperm.xlu0 %1167, %v1470_v0  }
  0x44   : > { %v354_v16 = vsub.s32 %v350_v9, %v353_v15  ;;  %v377_v42 = vsel %vm292_vm7, %v376_v41, %v1481_v13 }
  0x45   : > { %1162 = vset.pattern.permute.xlu1 %v1293_v3  ;;  %v379_v43 = vsel %vm291_vm8, 0, %v377_v42 }
  0x46   : > { %v356_v1 = vsub.s32 0, %v354_v16  ;;  %606 = vperm.xlu1 %1162, %v588_v19   ;;  %v383_v46 = vand.u32 3, %v379_v43  ;;  %v486_v52 = vadd.s32 3, %v379_v43 }
  0x47   : > { %730 = vperm.xlu0 %1167, %v1447_v18  }
  0x48   : > { %v1072_v20 = vmin.u32 %v356_v1, %v354_v16  ;;  %vm385_vm9 = vcmp.eq.s32.totalorder %v383_v46, 0  ;;  %vm388_vm10 = vcmp.eq.s32.totalorder %v383_v46, 2  ;;  %vm384_vm11 = vcmp.lt.s32.totalorder %v383_v46, 2 }
  0x49   : > { %v487_v56 = vand.u32 3, %v486_v52 }
  0x4a   : > { %v358_v22 = vclz %v1072_v20  ;;  %641 = vperm.xlu1 %1162, %v616_v21  }
  0x4b   : > { %1171 = vset.pattern.permute.xlu0 %v1302_v24  ;;  %vm489_vm13 = vcmp.eq.s32.totalorder %v487_v56, 0  ;;  %vm492_vm14 = vcmp.eq.s32.totalorder %v487_v56, 2  ;;  %vm488_vm15 = vcmp.lt.s32.totalorder %v487_v56, 2 }
  0x4c   : > { %v1073_v23 = vadd.s32 4294967294, %v358_v22  ;;  %757 = vperm.xlu0 %1171, %v1435_v14  }
  0x4e   : > { %vm1074_vm6 = vcmp.lt.s32.totalorder %v1073_v23, 0  ;;  %1164 = vset.pattern.permute.xlu1 %v1294_v12 }
  0x4f   : > { %691 = vperm.xlu1 %1164, %v1470_v0   ;;  %v361_v25 = vsel %vm1074_vm6, 0, %v1073_v23 }
  0x50   : > { %765 = vperm.xlu0 %1171, %v616_v21   ;;  %v366_v27 = vsub.s32 4294967266, %v361_v25  ;;  %v362_v30 = vsub.s32 32, %v361_v25  ;;  %v363_v32 = vshll.u32 %v354_v16, %v361_v25 }
  0x52   : > { %v367_v31 = vadd.s32 127, %v366_v27  ;;  %v364_v33 = vshrl.u32 %v346_v29, %v362_v30  ;;  %v1538_v27 = vld [vmem:[%s1418_s22 + $0x2] sm:$0x1]  ;;  %v1303_v30 = vmov 0.0   ;;  %s1556_s22 = sand.u32 1, %s1282_s27  }
  0x53   : > { %1165 = vset.pattern.permute.xlu1 %v1292_v2  ;;  %vm617_vm0 = vcmp.eq.f32.partialorder %v1538_v27, 0.0  ;;  %vm652_vm1 = vcmp.eq.f32.partialorder %v1538_v27, 1.0  ;;  %vm683_vm2 = vcmp.eq.f32.partialorder %v1538_v27, 2.0  ;;  %vm714_vm3 = vcmp.eq.f32.partialorder %v1538_v27, 3.0  ;;  %s1069_s23 = sshll.u32 %s1556_s22, 5  ;;  %s950_s15 = scalar_lea.sflag [#allocation6], %s1556_s22 }
  0x54   : > { %672 = vperm.xlu1 %1165, %v616_v21   ;;  %1175 = vset.pattern.permute.xlu0 %v1293_v3  ;;  %v368_v34 = vshll.u32 %v367_v31, 23  ;;  %v365_v2 = vor.u32 %v364_v33, %v363_v32  ;;  %v1080_v31 = vsel %vm617_vm0, 1.0, %v1303_v30  ;;  %vm745_vm4 = vcmp.eq.f32.partialorder %v1538_v27, 4.0  ;;  %s1561_s24 = scalar_lea.vmem [#allocation5], %s1069_s23 }
  0x55   : > { %907 = vperm.xlu0 %1175, %v897_v26   ;;  %s975_s25 = sshll.u32 %s1561_s24, 4  ;;  %s1587_s25 = int_to_ptr.vmem [resolvable:$true] %s975_s25 }
  0x56   : > { %v369_v35 = vor.u32 4788187, %v368_v34  ;;  %v372_v37 = vcvt.s32.f32 %v365_v2  ;;  %s1196_s16 = scalar_lea.vmem %s1587_s25, 512  ;;  %p1203_p0 = scmp.lt.s32.totalorder %s1587_s25, %s1201_s18 }
  0x57   : > { %p1197_p11 = scmp.ne.s32.totalorder %s1587_s25, %s1196_s16  ;;  %p1204_p1 = scmp.lt.s32.totalorder %s1202_s19, %s1196_s16 }
  0x58   : > { %1166 = vset.pattern.permute.xlu1 %v1294_v12  ;;  %v370_v36 = vand.u32 2147483647, %v369_v35  ;;  %v1081_v35 = vsel %vm652_vm1, 1.0, %v1303_v30 }
  0x59   : > { %699 = vperm.xlu1 %1166, %v1447_v18   ;;  %936 = vperm.xlu0 %1175, %v933_v28   ;;  %p1198_p12 = pnand %p1197_p11, %p1391_p5  ;;  %p1205_p2 = por %p1204_p1, %p1203_p0 }
  0x5a   : > { %v373_v38 = vmul.f32 %v372_v37, %v370_v36  ;;  %v623_v37 = vrot.slane %v1080_v31, %v1528_v54 }
  0x5b   : > { %p1199_p13 = pneg %p1198_p12 }
  0x5c   : > { %v374_v39 = vxor.u32 2147483648, %v373_v38 }
  0x5d   : > { %1168 = vset.pattern.permute.xlu1 %v1301_v17  ;;  %p1206_p3 = pnand %p1205_p2, %p1199_p13 }
  0x5e   : > { %726 = vperm.xlu1 %1168, %v1435_v14   ;;  %v375_v14 = vsel %vm292_vm7, %v374_v39, %v373_v38 }
  0x62   : > { %1169 = vset.pattern.permute.xlu1 %v1294_v12  ;;  %v378_v12 = vsel %vm291_vm8, %v1424_v7, %v375_v14 }
  0x63   : > { %703 = vperm.xlu1 %1169, %v616_v21   ;;  %1176 = vcosq.f32 %v378_v12 }
  0x64   : > { %1178 = vsinq.f32 %v378_v12 }
  0x67   : > { %1170 = vset.pattern.permute.xlu1 %v1302_v24 }
  0x68   : > { %753 = vperm.xlu1 %1170, %v1470_v0  }
  0x6c   : > { %1172 = vset.pattern.permute.xlu1 %v1301_v17 }
  0x6d   : > { %734 = vperm.xlu1 %1172, %v616_v21   ;;  %v1177_v44 = vpop.eup %1176 }
  0x6e   : > { %v1179_v45 = vpop.eup %1178 }
  0x6f   : > { %v386_v47 = vxor.u32 2147483648, %v1179_v45 }
  0x71   : > { %1173 = vset.pattern.permute.xlu1 %v1302_v24  ;;  %v387_v49 = vsel %vm385_vm9, %v1177_v44, %v386_v47  ;;  %v491_v63 = vsel %vm489_vm13, %v1177_v44, %v386_v47  ;;  %v1082_v47 = vsel %vm683_vm2, 1.0, %v1303_v30 }
  0x72   : > { %761 = vperm.xlu1 %1173, %v1447_v18   ;;  %v899_v18 = vld [vmem:[%s1702_s4 + $0x18] sm:$0xff] }
  0x76   : > { %1174 = vset.pattern.permute.xlu1 %v1293_v3  ;;  %v389_v3 = vxor.u32 2147483648, %v1177_v44 }
  0x77   : > { %902 = vperm.xlu1 %1174, %v896_v40   ;;  %v658_v40 = vrot.slane %v1081_v35, %v1528_v54 }
  0x78   : > { %v390_v50 = vsel %vm388_vm10, %v389_v3, %v1179_v45  ;;  %v494_v0 = vsel %vm492_vm14, %v389_v3, %v1179_v45 }
  0x79   : > { %v391_v53 = vsel %vm384_vm11, %v387_v49, %v390_v50  ;;  %v495_v8 = vsel %vm488_vm15, %v491_v63, %v494_v0  ;;  %v689_v50 = vrot.slane %v1082_v47, %v1528_v54 }
  0x7a   : > { %v392_v55 = vsel %vm382_vm12, nan, %v391_v53  ;;  %v496_v15 = vsel %vm382_vm12, nan, %v495_v8 }
  0x7b   : > { %912 = vperm.xlu1 %1174, %v898_v11   ;;  %v548_v57 = vrot.slane %v392_v55, %v1528_v54  ;;  %v576_v20 = vrot.slane %v496_v15, %v1528_v54 }
  0x7f   : > { %917 = vperm.xlu1 %1174, %v899_v18  }
  0x93   : > { %v531_v59 = vpop.permute.xlu1 %530  ;;  %v504_v60 = vpop.permute.xlu0 %503 }
  0x94   : > { %v549_v61 = vmul.f32 %v548_v57, %v531_v59  ;;  %v525_v62 = vmul.f32 %v1079_v58, %v504_v60 }
  0x96   : > { %v553_v4 = vadd.f32 %v549_v61, %v525_v62 }
  0x97   : > { %v535_v5 = vpop.permute.xlu1 %534  ;;  %v509_v6 = vpop.permute.xlu0 %508 }
  0x98   : > { %v550_v9 = vmul.f32 %v548_v57, %v535_v5  ;;  %v526_v10 = vmul.f32 %v1079_v58, %v509_v6 }
  0x9a   : > { %v554_v13 = vadd.f32 %v550_v9, %v526_v10  ;;  %v1083_v10 = vsel %vm714_vm3, 1.0, %v1303_v30 }
  0x9b   : > { %v539_v16 = vpop.permute.xlu1 %538  ;;  %v514_v17 = vpop.permute.xlu0 %513 }
  0x9c   : > { %v551_v19 = vmul.f32 %v548_v57, %v539_v16  ;;  %v527_v1 = vmul.f32 %v1079_v58, %v514_v17  ;;  %v720_v16 = vrot.slane %v1083_v10, %v1528_v54 }
  0x9e   : > { %v555_v21 = vadd.f32 %v551_v19, %v527_v1 }
  0x9f   : > { %v592_v22 = vpop.permute.xlu0 %591 }
  0xa0   : > { %v563_v23 = vpop.permute.xlu1 %562 }
  0xa1   : > { %v578_v24 = vmul.f32 %v576_v20, %v563_v23 }
  0xa3   : > { %v632_v25 = vpop.permute.xlu0 %631  ;;  %v582_v26 = vadd.f32 %v578_v24, %v554_v13 }
  0xa4   : > { %v645_v11 = vmul.f32 %v632_v25, %v623_v37 }
  0xa5   : > { %v519_v28 = vpop.permute.xlu1 %518 }
  0xa6   : > { %v528_v34 = vmul.f32 %v1079_v58, %v519_v28 }
  0xa7   : > { %v637_v29 = vpop.permute.xlu0 %636 }
  0xa8   : > { %v646_v52 = vmul.f32 %v637_v29, %v623_v37  ;;  %v1084_v29 = vsel %vm745_vm4, 1.0, %v1303_v30 }
  0xaa   : > { %v567_v7 = vpop.permute.xlu1 %566 }
  0xab   : > { %v579_v32 = vmul.f32 %v576_v20, %v567_v7 }
  0xac   : > { %v543_v33 = vpop.permute.xlu0 %542 }
  0xad   : > { %v552_v2 = vmul.f32 %v548_v57, %v543_v33  ;;  %v583_v36 = vadd.f32 %v579_v32, %v555_v21  ;;  %v751_v33 = vrot.slane %v1084_v29, %v1528_v54 }
  0xae   : > { %v571_v38 = vpop.permute.xlu1 %570 }
  0xaf   : > { %v556_v39 = vadd.f32 %v552_v2, %v528_v34  ;;  %v580_v14 = vmul.f32 %v576_v20, %v571_v38 }
  0xb0   : > { %v665_v12 = vpop.permute.xlu0 %664 }
  0xb1   : > { %v584_v41 = vadd.f32 %v580_v14, %v556_v39  ;;  %v676_v18 = vmul.f32 %v665_v12, %v658_v40 }
  0xb3   : > { %v597_v42 = vpop.permute.xlu1 %596 }
  0xb4   : > { %v610_v43 = vadd.f32 %v597_v42, %v582_v26  ;;  %v669_v44 = vpop.permute.xlu0 %668 }
  0xb5   : > { %v677_v53 = vmul.f32 %v669_v44, %v658_v40 }
  0xb6   : > { %v649_v45 = vadd.f32 %v645_v11, %v610_v43 }
  0xb7   : > { %v627_v46 = vpop.permute.xlu1 %626 }
  0xb8   : > { %v680_v3 = vadd.f32 %v676_v18, %v649_v45  ;;  %v644_v58 = vmul.f32 %v627_v46, %v623_v37 }
  0xb9   : > { %v559_v48 = vpop.permute.xlu0 %558 }
  0xba   : > { %v577_v49 = vmul.f32 %v576_v20, %v559_v48 }
  0xbb   : > { %v602_v51 = vpop.permute.xlu1 %601 }
  0xbc   : > { %v581_v55 = vadd.f32 %v577_v49, %v553_v4  ;;  %v611_v56 = vadd.f32 %v602_v51, %v583_v36 }
  0xbd   : > { %v696_v57 = vpop.permute.xlu0 %695 }
  0xbe   : > { %v609_v59 = vadd.f32 %v592_v22, %v581_v55  ;;  %v650_v60 = vadd.f32 %v646_v52, %v611_v56  ;;  %v707_v61 = vmul.f32 %v696_v57, %v689_v50 }
  0xc0   : > { %v711_v62 = vadd.f32 %v707_v61, %v680_v3  ;;  %v661_v63 = vpop.permute.xlu1 %660  ;;  %v648_v0 = vadd.f32 %v644_v58, %v609_v59  ;;  %v681_v5 = vadd.f32 %v677_v53, %v650_v60 }
  0xc1   : > { %v675_v6 = vmul.f32 %v661_v63, %v658_v40 }
  0xc2   : > { %v723_v19 = vpop.permute.xlu0 %722 }
  0xc3   : > { %v679_v8 = vadd.f32 %v675_v6, %v648_v0  ;;  %v737_v21 = vmul.f32 %v723_v19, %v720_v16 }
  0xc5   : > { %v607_v9 = vpop.permute.xlu1 %606 }
  0xc6   : > { %v612_v15 = vadd.f32 %v607_v9, %v584_v41  ;;  %v731_v26 = vpop.permute.xlu0 %730 }
  0xc7   : > { %v739_v32 = vmul.f32 %v731_v26, %v720_v16 }
  0xc9   : > { %v642_v13 = vpop.permute.xlu1 %641 }
  0xca   : > { %v647_v4 = vmul.f32 %v642_v13, %v623_v37 }
  0xcb   : > { %v758_v2 = vpop.permute.xlu0 %757 }
  0xcc   : > { %v651_v17 = vadd.f32 %v647_v4, %v612_v15  ;;  %v769_v38 = vmul.f32 %v758_v2, %v751_v33 }
  0xce   : > { %v692_v1 = vpop.permute.xlu1 %691 }
  0xcf   : > { %v706_v20 = vmul.f32 %v692_v1, %v689_v50  ;;  %v766_v45 = vpop.permute.xlu0 %765 }
  0xd0   : > { %v771_v48 = vmul.f32 %v766_v45, %v751_v33 }
  0xd1   : > { %v710_v22 = vadd.f32 %v706_v20, %v679_v8 }
  0xd3   : > { %v741_v23 = vadd.f32 %v737_v21, %v710_v22  ;;  %v673_v24 = vpop.permute.xlu1 %672 }
  0xd4   : > { %v678_v25 = vmul.f32 %v673_v24, %v658_v40 }
  0xd6   : > { %v682_v28 = vadd.f32 %v678_v25, %v651_v17 }
  0xd8   : > { %v700_v7 = vpop.permute.xlu1 %699 }
  0xd9   : > { %v708_v31 = vmul.f32 %v700_v7, %v689_v50 }
  0xdb   : > { %v712_v34 = vadd.f32 %v708_v31, %v681_v5 }
  0xdd   : > { %v743_v35 = vadd.f32 %v739_v32, %v712_v34  ;;  %v727_v36 = vpop.permute.xlu1 %726 }
  0xde   : > { %v738_v37 = vmul.f32 %v727_v36, %v720_v16 }
  0xe0   : > { %v742_v27 = vadd.f32 %v738_v37, %v711_v62 }
  0xe2   : > { %v1559_v39 = vadd.f32 %v769_v38, %v742_v27  ;;  %v704_v14 = vpop.permute.xlu1 %703 }
  0xe3   : > { %v709_v30 = vmul.f32 %v704_v14, %v689_v50 }
  0xe4   : > { %777 = vst [vmem:[%s1561_s24 + $0x8] sm:$0xff] %v1559_v39  ;;  %v1566_v12 = vmul.f32 0.70710677, %v1559_v39 }
  0xe5   : > { %v713_v40 = vadd.f32 %v709_v30, %v682_v28 }
  0xe6   : > { %v1569_v41 = vand.u32 2147483647, %v1566_v12 }
  0xe7   : > { %v754_v11 = vpop.permute.xlu1 %753 }
  0xe8   : > { %v801_v42 = vmul.f32 0.3275911, %v1569_v41  ;;  %v768_v18 = vmul.f32 %v754_v11, %v751_v33 }
  0xea   : > { %v805_v43 = vadd.f32 1.0, %v801_v42  ;;  %v1572_v44 = vadd.f32 %v768_v18, %v741_v23 }
  0xec   : > { %1180 = vrcp.f32 %v805_v43  ;;  %776 = vst [vmem:[%s1561_s24] sm:$0xff] %v1572_v44  ;;  %v1577_v46 = vmul.f32 0.70710677, %v1572_v44  ;;  %v735_v47 = vpop.permute.xlu1 %734 }
  0xed   : > { %v740_v3 = vmul.f32 %v735_v47, %v720_v16 }
  0xee   : > { %v1580_v49 = vand.u32 2147483647, %v1577_v46 }
  0xef   : > { %v744_v50 = vadd.f32 %v740_v3, %v713_v40 }
  0xf0   : > { %v800_v51 = vmul.f32 0.3275911, %v1580_v49 }
  0xf1   : > { %v1585_v52 = vadd.f32 %v771_v48, %v744_v50  ;;  %v762_v53 = vpop.permute.xlu1 %761 }
  0xf2   : > { %v804_v55 = vadd.f32 1.0, %v800_v51  ;;  %v770_v56 = vmul.f32 %v762_v53, %v751_v33 }
  0xf3   : > { %779 = vst [vmem:[%s1561_s24 + $0x18] sm:$0xff] %v1585_v52  ;;  %v1592_v57 = vmul.f32 0.70710677, %v1585_v52 }
  0xf4   : > { %1182 = vrcp.f32 %v804_v55  ;;  %v1599_v58 = vadd.f32 %v770_v56, %v743_v35 }
  0xf5   : > { %v1602_v59 = vand.u32 2147483647, %v1592_v57 }
  0xf6   : > { %v1181_v60 = vpop.eup %1180  ;;  %778 = vst [vmem:[%s1561_s24 + $0x10] sm:$0xff] %v1599_v58  ;;  %v1607_v61 = vmul.f32 0.70710677, %v1599_v58 }
  0xf7   : > { %v813_v62 = vmul.f32 %v1181_v60, %v805_v43  ;;  %v803_v63 = vmul.f32 0.3275911, %v1602_v59 }
  0xf8   : > { %1209 = shalt.err (!%p1206_p3)
}
  0xf9   : > { %s1210_s20 = scalar_lea.hbm %s1597_s14, 512  ;;  %s1214_s24 = scalar_lea.hbm %s1705_s7, 1536 }
  0xfa   : > { %p1211_p4 = scmp.ne.s32.totalorder %s1597_s14, %s1210_s20  ;;  %p1215_p9 = scmp.lt.u32.totalorder %s1597_s14, %s1705_s7 }
  0xfb   : > { %p1216_p10 = scmp.lt.u32.totalorder %s1214_s24, %s1210_s20  ;;  %p1218_p12 = scmp.lt.u32.totalorder %s1210_s20, %s1597_s14 }
  0xfc   : > { %p1212_p7 = pnand %p1211_p4, %p1391_p5 }
  0xfd   : > { %p1217_p11 = por %p1216_p10, %p1215_p9 }
  0xfe   : > { %p1213_p8 = pneg %p1212_p7 }
  0xff   : > { %p1219_p13 = por %p1218_p12, %p1217_p11 }
 0x101   : > { %p1220_p0 = pnand %p1219_p13, %p1213_p8 }
 0x103   : > { %1223 = shalt.err (!%p1220_p0)
}
 0x104   : > { %s1305_s10 = smov 128   ;;  %s1306_s16 = smov 384   ;;  %v861_v0 = vsub.f32 0.0, %v1569_v41  ;;  %v798_v5 = vand.u32 2147483647, %v1607_v61  ;;  %v817_v6 = vsub.f32 2.0, %v813_v62  ;;  %v1183_v16 = vpop.eup %1182 }
 0x105   : > { %s1307_s17 = smov 8   ;;  %v807_v8 = vadd.f32 1.0, %v803_v63  ;;  %v812_v17 = vmul.f32 %v1183_v16, %v804_v55  ;;  %v860_v20 = vsub.f32 0.0, %v1580_v49  ;;  %v863_v31 = vsub.f32 0.0, %v1602_v59  ;;  %s946_s21 = scalar_lea.sflag [#allocation4], %s1556_s22 }
 0x106   : > { %1095 = dma.vmem_to_hbm [thread:$0]  (%p1391_p5), %s1587_s25, 512, %s1597_s14, %s950_s15, %s1305_s10, %s1306_s16, %s1307_s17   ;;  %v802_v9 = vmul.f32 0.3275911, %v798_v5  ;;  %v821_v10 = vmul.f32 %v1181_v60, %v817_v6  ;;  %v865_v13 = vmul.f32 %v861_v0, %v1569_v41  ;;  %v862_v14 = vsub.f32 0.0, %v798_v5 }
 0x107   : > { %1184 = vrcp.f32 %v807_v8  ;;  %v816_v21 = vsub.f32 2.0, %v812_v17  ;;  %v864_v25 = vmul.f32 %v860_v20, %v1580_v49  ;;  %v867_v30 = vmul.f32 %v863_v31, %v1602_v59  ;;  %s1086_s25 = sshll.u32 %s1374_s5, 4  ;;  %s274_s14 = scalar_lea.vmem [#allocation3], %s1556_s22 }
 0x108   : > { %v806_v15 = vadd.f32 1.0, %v802_v9  ;;  %v825_v4 = vmul.f32 1.0614054, %v821_v10  ;;  %v870_v1 = vmul.f32 1.442695, %v865_v13  ;;  %v866_v3 = vmul.f32 %v862_v14, %v798_v5  ;;  %s963_s15 = sshll.u32 %s274_s14, 4  ;;  %s1655_s20 = scalar_lea.hbm %s1704_s6, %s1086_s25  ;;  %s1657_s15 = int_to_ptr.vmem [resolvable:$true] %s963_s15 }
 0x109   : > { %v820_v23 = vmul.f32 %v1183_v16, %v816_v21  ;;  %v868_v2 = vmul.f32 1.442695, %v864_v25  ;;  %v874_v49 = vmul.f32 1.442695, %v867_v30  ;;  %vm789_vm5 = vcmp.lt.f32.partialorder %v1566_v12, 0.0  ;;  %s1224_s23 = scalar_lea.vmem %s1657_s15, 16 }
 0x10a   : > { %1186 = vrcp.f32 %v806_v15  ;;  %v829_v19 = vadd.f32 -1.4531521, %v825_v4  ;;  %v872_v62 = vmul.f32 1.442695, %v866_v3  ;;  %vm788_vm6 = vcmp.lt.f32.partialorder %v1577_v46, 0.0  ;;  %v908_v46 = vpop.permute.xlu0 %907  ;;  %p1225_p1 = scmp.ne.s32.totalorder %s1657_s15, %s1224_s23  ;;  %s1309_s5 = smov [#allocation3]  }
 0x10b   : > { %1188 = vpow2.f32 %v870_v1  ;;  %v824_v29 = vmul.f32 1.0614054, %v820_v23  ;;  %v781_v25 = vmul.f32 0.5, %v1559_v39  ;;  %vm791_vm7 = vcmp.lt.f32.partialorder %v1592_v57, 0.0  ;;  %s1228_s24 = sshll.u32 %s1309_s5, 4  ;;  %s1229_s24 = int_to_ptr.vmem [resolvable:$false] %s1228_s24 }
 0x10c   : > { %v833_v22 = vmul.f32 %v829_v19, %v821_v10  ;;  %1190 = vpow2.f32 %v868_v2  ;;  %vm790_vm8 = vcmp.lt.f32.partialorder %v1607_v61, 0.0  ;;  %p1226_p2 = pnand %p1225_p1, %p1391_p5  ;;  %s1230_s30 = scalar_lea.vmem %s1229_s24, 32 }
 0x10d   : > { %v828_v33 = vadd.f32 -1.4531521, %v824_v29  ;;  %1192 = vpow2.f32 %v874_v49  ;;  %p1231_p4 = scmp.lt.s32.totalorder %s1657_s15, %s1229_s24  ;;  %p1232_p7 = scmp.lt.s32.totalorder %s1230_s30, %s1224_s23 }
 0x10e   : > { %v837_v24 = vadd.f32 1.4214138, %v833_v22  ;;  %1194 = vpow2.f32 %v872_v62  ;;  %v937_v62 = vpop.permute.xlu0 %936  ;;  %p1227_p3 = pneg %p1226_p2 }
 0x10f   : > { %v832_v38 = vmul.f32 %v828_v33, %v820_v23  ;;  %p1233_p8 = por %p1232_p7, %p1231_p4 }
 0x110   : > { %v841_v28 = vmul.f32 %v837_v24, %v821_v10 }
 0x111   : > { %v1185_v26 = vpop.eup %1184  ;;  %v836_v11 = vadd.f32 1.4214138, %v832_v38  ;;  %p1234_p9 = pnand %p1233_p8, %p1227_p3 }
 0x112   : > { %v815_v7 = vmul.f32 %v1185_v26, %v807_v8  ;;  %v845_v32 = vadd.f32 -0.28449672, %v841_v28  ;;  %v1308_v8 = vmov 1.0  }
 0x113   : > { %v840_v45 = vmul.f32 %v836_v11, %v820_v23  ;;  %v793_v9 = vsel %vm789_vm5, -1.0, %v1308_v8  ;;  %v792_v22 = vsel %vm788_vm6, -1.0, %v1308_v8  ;;  %v795_v38 = vsel %vm791_vm7, -1.0, %v1308_v8 }
 0x114   : > { %v1187_v34 = vpop.eup %1186  ;;  %v819_v35 = vsub.f32 2.0, %v815_v7  ;;  %v849_v37 = vmul.f32 %v845_v32, %v821_v10  ;;  %v794_v11 = vsel %vm790_vm8, -1.0, %v1308_v8 }
 0x115   : > { %v814_v36 = vmul.f32 %v1187_v34, %v806_v15  ;;  %v1189_v47 = vpop.eup %1188  ;;  %v844_v51 = vadd.f32 -0.28449672, %v840_v45  ;;  %v782_v45 = vmul.f32 0.5, %v1599_v58 }
 0x116   : > { %v823_v27 = vmul.f32 %v1185_v26, %v819_v35  ;;  %v853_v41 = vadd.f32 0.2548296, %v849_v37  ;;  %v1191_v4 = vpop.eup %1190  ;;  %v903_v37 = vpop.permute.xlu1 %902 }
 0x117   : > { %v818_v40 = vsub.f32 2.0, %v814_v36  ;;  %v848_v59 = vmul.f32 %v844_v51, %v820_v23  ;;  %v1193_v7 = vpop.eup %1192 }
 0x118   : > { %v827_v42 = vmul.f32 1.0614054, %v823_v27  ;;  %v857_v43 = vmul.f32 %v853_v41, %v821_v10  ;;  %v1195_v36 = vpop.eup %1194 }
 0x119   : > { %v822_v18 = vmul.f32 %v1187_v34, %v818_v40  ;;  %v852_v0 = vadd.f32 0.2548296, %v848_v59 }
 0x11a   : > { %v831_v48 = vadd.f32 -1.4531521, %v827_v42  ;;  %v877_v50 = vmul.f32 %v1189_v47, %v857_v43  ;;  %v913_v57 = vpop.permute.xlu1 %912  ;;  %v783_v47 = vmul.f32 0.5, %v1585_v52  ;;  %v942_v52 = vrot.slane %v937_v62, %v1528_v54 }
 0x11b   : > { %v826_v53 = vmul.f32 1.0614054, %v822_v18  ;;  %v856_v13 = vmul.f32 %v852_v0, %v820_v23  ;;  %v780_v23 = vmul.f32 0.5, %v1572_v44 }
 0x11c   : > { %v835_v55 = vmul.f32 %v831_v48, %v823_v27  ;;  %v881_v56 = vsub.f32 1.0, %v877_v50 }
 0x11d   : > { %v830_v60 = vadd.f32 -1.4531521, %v826_v53  ;;  %v876_v12 = vmul.f32 %v1191_v4, %v856_v13 }
 0x11e   : > { %v839_v63 = vadd.f32 1.4214138, %v835_v55  ;;  %v885_v5 = vmul.f32 %v881_v56, %v793_v9  ;;  %v918_v50 = vpop.permute.xlu1 %917 }
 0x11f   : > { %v834_v6 = vmul.f32 %v830_v60, %v822_v18  ;;  %v880_v20 = vsub.f32 1.0, %v876_v12 }
 0x120   : > { %v843_v10 = vmul.f32 %v839_v63, %v823_v27  ;;  %v889_v1 = vadd.f32 1.0, %v885_v5 }
 0x121   : > { %v838_v15 = vadd.f32 1.4214138, %v834_v6  ;;  %v884_v26 = vmul.f32 %v880_v20, %v792_v22 }
 0x122   : > { %v847_v16 = vadd.f32 -0.28449672, %v843_v10  ;;  %v893_v31 = vmul.f32 %v889_v1, %v781_v25 }
 0x123   : > { %v842_v17 = vmul.f32 %v838_v15, %v822_v18  ;;  %v888_v32 = vadd.f32 1.0, %v884_v26 }
 0x124   : > { %v851_v19 = vmul.f32 %v847_v16, %v823_v27  ;;  %v921_v39 = vmul.f32 %v908_v46, %v893_v31 }
 0x125   : > { %v846_v21 = vadd.f32 -0.28449672, %v842_v17  ;;  %v892_v2 = vmul.f32 %v888_v32, %v780_v23 }
 0x126   : > { %v855_v24 = vadd.f32 0.2548296, %v851_v19 }
 0x127   : > { %v850_v28 = vmul.f32 %v846_v21, %v822_v18  ;;  %v920_v30 = vmul.f32 %v903_v37, %v892_v2 }
 0x128   : > { %v859_v29 = vmul.f32 %v855_v24, %v823_v27 }
 0x129   : > { %v854_v33 = vadd.f32 0.2548296, %v850_v28  ;;  %v924_v40 = vadd.f32 %v921_v39, %v920_v30 }
 0x12a   : > { %v879_v34 = vmul.f32 %v1193_v7, %v859_v29 }
 0x12b   : > { %v858_v35 = vmul.f32 %v854_v33, %v822_v18 }
 0x12c   : > { %v883_v14 = vsub.f32 1.0, %v879_v34 }
 0x12d   : > { %v878_v44 = vmul.f32 %v1195_v36, %v858_v35 }
 0x12e   : > { %v887_v27 = vmul.f32 %v883_v14, %v795_v38 }
 0x12f   : > { %v882_v41 = vsub.f32 1.0, %v878_v44 }
 0x130   : > { %v891_v43 = vadd.f32 1.0, %v887_v27 }
 0x131   : > { %v886_v42 = vmul.f32 %v882_v41, %v794_v11 }
 0x132   : > { %v895_v48 = vmul.f32 %v891_v43, %v783_v47 }
 0x133   : > { %v890_v18 = vadd.f32 1.0, %v886_v42 }
 0x134   : > { %v923_v51 = vmul.f32 %v918_v50, %v895_v48 }
 0x135   : > { %v894_v3 = vmul.f32 %v890_v18, %v782_v45 }
 0x137   : > { %v922_v49 = vmul.f32 %v913_v57, %v894_v3 }
 0x139   : > { %v925_v61 = vadd.f32 %v924_v40, %v922_v49 }
 0x13b   : > { %v926_v53 = vadd.f32 %v925_v61, %v923_v51 }
 0x13d   : > { %v927_v55 = vrot.slane %v926_v53, 4 }
 0x13f   : > { %v928_v56 = vadd.f32 %v927_v55, %v926_v53 }
 0x141   : > { %v929_v59 = vrot.slane %v928_v56, 2 }
 0x143   : > { %v930_v60 = vadd.f32 %v929_v59, %v928_v56 }
 0x145   : > { %v931_v58 = vrot.slane %v930_v60, 1 }
 0x147   : > { %v932_v63 = vadd.f32 %v931_v58, %v930_v60 }
 0x149   : > { %v943_v0 = vadd.f32 %v942_v52, %v932_v63 }
 0x14b   : > { %944 = vst [vmem:[%s274_s14] sm:$0x1] %v943_v0 }
 0x14c   : > { %1237 = shalt.err (!%p1234_p9)
}
 0x14d   : > { %s1238_s22 = scalar_lea.hbm %s1655_s20, 16  ;;  %s1242_s16 = scalar_lea.hbm %s1704_s6, 48 }
 0x14e   : > { %p1239_p10 = scmp.ne.s32.totalorder %s1655_s20, %s1238_s22  ;;  %p1243_p13 = scmp.lt.u32.totalorder %s1655_s20, %s1704_s6 }
 0x14f   : > { %p1244_p0 = scmp.lt.u32.totalorder %s1242_s16, %s1238_s22  ;;  %p1246_p2 = scmp.lt.u32.totalorder %s1238_s22, %s1655_s20 }
 0x150   : > { %p1240_p11 = pnand %p1239_p10, %p1391_p5 }
 0x151   : > { %p1245_p1 = por %p1244_p0, %p1243_p13 }
 0x152   : > { %p1241_p12 = pneg %p1240_p11 }
 0x153   : > { %p1247_p3 = por %p1246_p2, %p1245_p1 }
 0x155   : > { %p1248_p4 = pnand %p1247_p3, %p1241_p12 }
 0x157   : > { %1251 = shalt.err (!%p1248_p4)
}
 0x158   : > { %1094 = dma.vmem_to_hbm [thread:$0]  (%p1391_p5), %s1657_s15, 16, %s1655_s20, %s946_s21  }
 0x159 PF: > { %p1105_p7 = scmp.ge.s32.totalorder %s1290_s29, 2  ;;  %s990_s14 = sand.u32 1, %s1278_s26  }
 0x15a   : > { %s991_s18 = scalar_lea.sflag [#allocation4], %s990_s14 }
 0x15b   : > { %p1099_p8 = pnand %p1105_p7, %p1395_p6 }
 0x15d   : > { %1269 = dma.done.wait (!%p1099_p8), %s991_s18, 16  }
 0x15e   : > { %1271 = vsyncadd (!%p1099_p8), %s991_s18, 4294967280  ;;  %s999_s19 = scalar_lea.sflag [#allocation6], %s990_s14 }
 0x15f   : > { %1273 = dma.done.wait (!%p1099_p8), %s999_s19, 512  }
 0x160   : > { %1275 = vsyncadd (!%p1099_p8), %s999_s19, 4294966784  ;;  %p23_p5 = scmp.ge.s32.totalorder %s1378_s8, 5   ;;  %s1708_s26 = smov %s1282_s27 }
 0x161   : > { %s1709_s27 = smov %s1286_s28  ;;  %s1710_s28 = smov %s1389_s11 }
 0x162   : > { %s1711_s29 = smov %s1378_s8  ;;  %25 = sbr.rel (!%p23_p5) target bundleno = 8 (0x8), region = 96 }
 0x169   :  { %1004 = vsyncpa [#allocation4], 1 }
 0x16a   :  { %1006 = vsyncpa [#allocation4 + $0x1], 1 }
 0x16b   :  { %1007 = vsyncpa [#allocation6], 1 }
 0x16c   :  { %1009 = vsyncpa [#allocation6 + $0x1], 1 }

</bundles_post_ra>
